<compile_context>
chip_gen: v6e
topology: v6e:2x2x1
jax: 0.10.0
libtpu: 0.0.40
codegen_flags: <defaults>
</compile_context>

<pallas_src>
import jax
import jax.numpy as jnp
import numpy as np
from jax import lax
from jax.experimental import pallas as pl
from jax.experimental.pallas import tpu as pltpu


def _lstm_varlen_kernel(maxlen_ref, lens_ref, gx_ref, whh_ref, out_ref):
    """Whole variable-length LSTM recurrence in one kernel invocation.

    maxlen_ref: (1,)      int32 scalar prefetch (SMEM) = max(x_len)
    lens_ref  : (B, 1)    int32 sequence lengths
    gx_ref    : (T, B, 4H) precomputed x_t @ W_ih^T + (b_ih + b_hh)
    whh_ref   : (H, 4H)   fused recurrent weights, transposed for h @ W
    out_ref   : (B, H)    last valid hidden state per sequence
    """
    B, H = out_ref.shape
    lens = lens_ref[...]              # (B, 1) int32, loaded once
    whh = whh_ref[...]                # (H, 4H), resident for the whole loop
    max_t = maxlen_ref[0]             # dynamic trip count (skips padded tail)

    def step(t, carry):
        h, c = carry
        # One fused MXU push per time step: (B, H) @ (H, 4H) -> (B, 4H).
        gates = gx_ref[t] + jnp.dot(h, whh, preferred_element_type=jnp.float32)
        i_g = jax.nn.sigmoid(gates[:, 0 * H:1 * H])
        f_g = jax.nn.sigmoid(gates[:, 1 * H:2 * H])
        g_g = jnp.tanh(gates[:, 2 * H:3 * H])
        o_g = jax.nn.sigmoid(gates[:, 3 * H:4 * H])
        c_new = f_g * c + i_g * g_g
        h_new = o_g * jnp.tanh(c_new)
        # Freeze state for sequences that have already ended at step t.
        valid = t < lens                              # (B, 1) bool
        return (jnp.where(valid, h_new, h), jnp.where(valid, c_new, c))

    h0 = jnp.zeros((B, H), jnp.float32)
    c0 = jnp.zeros((B, H), jnp.float32)
    hT, _ = lax.fori_loop(0, max_t, step, (h0, c0))
    out_ref[...] = hT.astype(out_ref.dtype)


def lstm_varlen_last_hidden(x, x_len, w_ih, w_hh, b_ih, b_hh):
    """x: (B, T, I) float32; x_len: (B,) int32.
    w_ih: (4H, I), w_hh: (4H, H), b_ih/b_hh: (4H,)  (PyTorch nn.LSTM layout).
    Returns (B, H) = last valid hidden state per sequence (original order).
    """
    B, T, I = x.shape
    H = w_hh.shape[1]
    G = 4 * H

    # Hoist the time-independent input projection out of the serial recurrence:
    # one large MXU-efficient matmul done by XLA outside the kernel.
    bias = (b_ih + b_hh).astype(jnp.float32)                         # (4H,)
    gx = (x.astype(jnp.float32).reshape(B * T, I)
          @ w_ih.astype(jnp.float32).T + bias).reshape(B, T, G)
    gx = jnp.transpose(gx, (1, 0, 2))                                # (T, B, 4H)

    # Fused recurrent weights, transposed for h @ W: (4H, H) -> (H, 4H).
    whh_t = jnp.transpose(w_hh.astype(jnp.float32))                  # (H, 4H)

    lens = x_len.astype(jnp.int32).reshape(B, 1)
    max_len = jnp.max(x_len).astype(jnp.int32).reshape(1)            # SMEM scalar

    grid_spec = pltpu.PrefetchScalarGridSpec(
        num_scalar_prefetch=1,
        grid=(1,),                                  # single serial invocation
        in_specs=[
            pl.BlockSpec((B, 1), lambda i, m: (0, 0)),        # lengths
            pl.BlockSpec((T, B, G), lambda i, m: (0, 0, 0)),  # gate pre-acts
            pl.BlockSpec((H, G), lambda i, m: (0, 0)),        # fused W_hh^T
        ],
        out_specs=pl.BlockSpec((B, H), lambda i, m: (0, 0)),
    )

    # TODO(synk): for very large production batches on v7x, add a leading
    # "parallel" batch-tile grid axis so both TensorCores are used; pointless
    # at B=4, so the grid stays a single "arbitrary" step here.
    return pl.pallas_call(
        _lstm_varlen_kernel,
        out_shape=jax.ShapeDtypeStruct((B, H), jnp.float32),
        grid_spec=grid_spec,
        compiler_params=pltpu.CompilerParams(
            dimension_semantics=("arbitrary",)),
    )(max_len, lens, gx, whh_t)


def lstm_varlen_reference(x, x_len, w_ih, w_hh, b_ih, b_hh):
    """Pure-JAX reference (masked scan over time)."""
    B, T, I = x.shape
    H = w_hh.shape[1]
    x_tbi = jnp.transpose(x, (1, 0, 2)).astype(jnp.float32)
    bias = (b_ih + b_hh).astype(jnp.float32)

    def step(carry, inp):
        h, c = carry
        x_t, t = inp
        gates = x_t @ w_ih.T + h @ w_hh.T + bias       # (B, 4H)
        i_g = jax.nn.sigmoid(gates[:, 0 * H:1 * H])
        f_g = jax.nn.sigmoid(gates[:, 1 * H:2 * H])
        g_g = jnp.tanh(gates[:, 2 * H:3 * H])
        o_g = jax.nn.sigmoid(gates[:, 3 * H:4 * H])
        c_new = f_g * c + i_g * g_g
        h_new = o_g * jnp.tanh(c_new)
        valid = (t < x_len)[:, None]
        h = jnp.where(valid, h_new, h)
        c = jnp.where(valid, c_new, c)
        return (h, c), None

    h0 = jnp.zeros((B, H), jnp.float32)
    c0 = jnp.zeros((B, H), jnp.float32)
    (hT, _), _ = jax.lax.scan(step, (h0, c0), (x_tbi, jnp.arange(T)))
    return hT


if __name__ == "__main__":
    # Module config: input_size=16, hidden_size=32, num_layers=1, unidirectional.
    B, T, I, H = 4, 8, 16, 32

    key = jax.random.PRNGKey(0)
    kx, kwi, kwh = jax.random.split(key, 3)

    x = jax.random.normal(kx, (B, T, I), dtype=jnp.float32)
    x_len = jnp.array([8, 3, 5, 1], dtype=jnp.int32)

    # Deterministic parameter init (module zeros biases; weights ~ U(-k, k)).
    k = 1.0 / np.sqrt(H)
    w_ih = jax.random.uniform(kwi, (4 * H, I), minval=-k, maxval=k,
                              dtype=jnp.float32)
    w_hh = jax.random.uniform(kwh, (4 * H, H), minval=-k, maxval=k,
                              dtype=jnp.float32)
    b_ih = jnp.zeros((4 * H,), jnp.float32)
    b_hh = jnp.zeros((4 * H,), jnp.float32)
    # TODO(synk): the module's orthogonal-init branch is a no-op when
    # bidirectional=False (range(num_layers * 0)); uniform weights used instead.

    out = lstm_varlen_last_hidden(x, x_len, w_ih, w_hh, b_ih, b_hh)
    out = jax.block_until_ready(out)

    ref = lstm_varlen_reference(x, x_len, w_ih, w_hh, b_ih, b_hh)
    np.testing.assert_allclose(np.asarray(out), np.asarray(ref),
                               rtol=1e-5, atol=1e-5)

    print("KERNEL_OK")
</pallas_src>

<mosaic_0001>
module attributes {stable_mosaic.version = 11 : i64} {
  func.func @_lstm_varlen_kernel(%arg0: i32, %arg1: memref<1xi32, #tpu.memory_space<smem>>, %arg2: memref<4x1xi32, #tpu.memory_space<vmem>>, %arg3: memref<8x4x128xf32, #tpu.memory_space<vmem>>, %arg4: memref<32x128xf32, #tpu.memory_space<vmem>>, %arg5: memref<4x32xf32, #tpu.memory_space<vmem>>) attributes {dimension_semantics = [#tpu.dimension_semantics<arbitrary>], iteration_bounds = array<i64: 1>, scalar_prefetch = 1 : i64, scratch_operands = 0 : i64, tpu.core_type = #tpu.core_type<tc>, window_params = [{pipeline_mode = #tpu.pipeline_mode<synchronous>, transform_indices = @transform_0, window_bounds = array<i64: 4, 1>}, {pipeline_mode = #tpu.pipeline_mode<synchronous>, transform_indices = @transform_1, window_bounds = array<i64: 8, 4, 128>}, {pipeline_mode = #tpu.pipeline_mode<synchronous>, transform_indices = @transform_2, window_bounds = array<i64: 32, 128>}, {pipeline_mode = #tpu.pipeline_mode<synchronous>, transform_indices = @transform_3, window_bounds = array<i64: 4, 32>}]} {
    %c0 = arith.constant 0 : index
    %c0_0 = arith.constant 0 : index
    %0 = vector.load %arg2[%c0, %c0_0] : memref<4x1xi32, #tpu.memory_space<vmem>>, vector<4x1xi32>
    %c0_1 = arith.constant 0 : index
    %c0_2 = arith.constant 0 : index
    %1 = vector.load %arg4[%c0_1, %c0_2] : memref<32x128xf32, #tpu.memory_space<vmem>>, vector<32x128xf32>
    %c0_3 = arith.constant 0 : index
    %2 = memref.load %arg1[%c0_3] : memref<1xi32, #tpu.memory_space<smem>>
    %cst = arith.constant 0.000000e+00 : f32
    %3 = vector.broadcast %cst : f32 to vector<4x32xf32>
    %cst_4 = arith.constant 0.000000e+00 : f32
    %4 = vector.broadcast %cst_4 : f32 to vector<4x32xf32>
    %c0_i32 = arith.constant 0 : i32
    %5 = arith.subi %2, %c0_i32 : i32
    %6 = arith.addi %c0_i32, %5 : i32
    %c1_i32 = arith.constant 1 : i32
    %7:2 = scf.for %arg6 = %c0_i32 to %6 step %c1_i32 iter_args(%arg7 = %3, %arg8 = %4) -> (vector<4x32xf32>, vector<4x32xf32>)  : i32 {
      %9 = arith.index_cast %arg6 : i32 to index
      %c0_7 = arith.constant 0 : index
      %c0_8 = arith.constant 0 : index
      %10 = vector.load %arg3[%9, %c0_7, %c0_8] : memref<8x4x128xf32, #tpu.memory_space<vmem>>, vector<1x4x128xf32>
      %11 = vector.shape_cast %10 : vector<1x4x128xf32> to vector<4x128xf32>
      %cst_9 = arith.constant dense<0.000000e+00> : vector<4x128xf32>
      %12 = tpu.matmul %arg7, %1, %cst_9 {dimension_numbers = #tpu.dot_dimension_numbers<[1], [0], [0], [1], [0, 0, 1, 1], [], []>} : vector<4x32xf32>, vector<32x128xf32>, vector<4x128xf32> -> vector<4x128xf32>
      %13 = arith.addf %11, %12 : vector<4x128xf32>
      %14 = vector.extract_strided_slice %13 {offsets = [0, 0], sizes = [4, 32], strides = [1, 1]} : vector<4x128xf32> to vector<4x32xf32>
      %15 = arith.negf %14 : vector<4x32xf32>
      %16 = math.exp %15 : vector<4x32xf32>
      %cst_10 = arith.constant 1.000000e+00 : f32
      %17 = vector.broadcast %cst_10 : f32 to vector<4x32xf32>
      %18 = arith.addf %17, %16 : vector<4x32xf32>
      %19 = arith.divf %17, %18 : vector<4x32xf32>
      %20 = vector.extract_strided_slice %13 {offsets = [0, 32], sizes = [4, 32], strides = [1, 1]} : vector<4x128xf32> to vector<4x32xf32>
      %21 = arith.negf %20 : vector<4x32xf32>
      %22 = math.exp %21 : vector<4x32xf32>
      %cst_11 = arith.constant 1.000000e+00 : f32
      %23 = vector.broadcast %cst_11 : f32 to vector<4x32xf32>
      %24 = arith.addf %23, %22 : vector<4x32xf32>
      %25 = arith.divf %23, %24 : vector<4x32xf32>
      %26 = vector.extract_strided_slice %13 {offsets = [0, 64], sizes = [4, 32], strides = [1, 1]} : vector<4x128xf32> to vector<4x32xf32>
      %27 = math.tanh %26 : vector<4x32xf32>
      %28 = vector.extract_strided_slice %13 {offsets = [0, 96], sizes = [4, 32], strides = [1, 1]} : vector<4x128xf32> to vector<4x32xf32>
      %29 = arith.negf %28 : vector<4x32xf32>
      %30 = math.exp %29 : vector<4x32xf32>
      %cst_12 = arith.constant 1.000000e+00 : f32
      %31 = vector.broadcast %cst_12 : f32 to vector<4x32xf32>
      %32 = arith.addf %31, %30 : vector<4x32xf32>
      %33 = arith.divf %31, %32 : vector<4x32xf32>
      %34 = arith.mulf %25, %arg8 : vector<4x32xf32>
      %35 = arith.mulf %19, %27 : vector<4x32xf32>
      %36 = arith.addf %34, %35 : vector<4x32xf32>
      %37 = math.tanh %36 : vector<4x32xf32>
      %38 = arith.mulf %33, %37 : vector<4x32xf32>
      %39 = vector.broadcast %arg6 : i32 to vector<4x1xi32>
      %40 = arith.cmpi slt, %39, %0 : vector<4x1xi32>
      %41 = vector.shape_cast %40 : vector<4x1xi1> to vector<4x1xi1>
      %42 = vector.broadcast %41 : vector<4x1xi1> to vector<4x32xi1>
      %43 = arith.select %42, %38, %arg7 : vector<4x32xi1>, vector<4x32xf32>
      %44 = vector.shape_cast %40 : vector<4x1xi1> to vector<4x1xi1>
      %45 = vector.broadcast %44 : vector<4x1xi1> to vector<4x32xi1>
      %46 = arith.select %45, %36, %arg8 : vector<4x32xi1>, vector<4x32xf32>
      scf.yield %43, %46 : vector<4x32xf32>, vector<4x32xf32>
    }
    %c0_5 = arith.constant 0 : index
    %c0_6 = arith.constant 0 : index
    %8 = vector.load %arg5[%c0_5, %c0_6] : memref<4x32xf32, #tpu.memory_space<vmem>>, vector<4x32xf32>
    tpu.vector_store %arg5[%c0_5, %c0_6], %7#0 {strides = array<i32>} : memref<4x32xf32, #tpu.memory_space<vmem>>, vector<4x32xf32>,
    return
  }
  func.func @transform_0(%arg0: i32, %arg1: memref<1xi32, #tpu.memory_space<smem>>) -> (i32, i32) {
    %c0_i32 = arith.constant 0 : i32
    %c0_i32_0 = arith.constant 0 : i32
    %c0_i32_1 = arith.constant 0 : i32
    return %c0_i32, %c0_i32_0 : i32, i32
  }
  func.func @transform_1(%arg0: i32, %arg1: memref<1xi32, #tpu.memory_space<smem>>) -> (i32, i32, i32) {
    %c0_i32 = arith.constant 0 : i32
    %c0_i32_0 = arith.constant 0 : i32
    %c0_i32_1 = arith.constant 0 : i32
    %c0_i32_2 = arith.constant 0 : i32
    return %c0_i32, %c0_i32_0, %c0_i32_1 : i32, i32, i32
  }
  func.func @transform_2(%arg0: i32, %arg1: memref<1xi32, #tpu.memory_space<smem>>) -> (i32, i32) {
    %c0_i32 = arith.constant 0 : i32
    %c0_i32_0 = arith.constant 0 : i32
    %c0_i32_1 = arith.constant 0 : i32
    return %c0_i32, %c0_i32_0 : i32, i32
  }
  func.func @transform_3(%arg0: i32, %arg1: memref<1xi32, #tpu.memory_space<smem>>) -> (i32, i32) {
    %c0_i32 = arith.constant 0 : i32
    %c0_i32_0 = arith.constant 0 : i32
    %c0_i32_1 = arith.constant 0 : i32
    return %c0_i32, %c0_i32_0 : i32, i32
  }
}

</mosaic_0001>

<bundles_post_ra>
// kernel: tpu_custom_call.1
= control target key start
LH: loop header
LB: loop body
LE: loop exit
PB: predicated region body
PF: predicated region fallthrough
CT: control target
= control target key end

     0   :  { %10 = vsyncpa [#allocation5], 0  ;;  %s478_s0 = inlined_call_operand.<no memory space> [shape: s32[1], index: 0, kind: input, shape index: {}]   ;;  %s479_s1 = inlined_call_operand.vmem [shape: s32[4,1], index: 1, kind: input, shape index: {}]   ;;  %s480_s2 = inlined_call_operand.hbm [shape: f32[8,4,128], index: 2, kind: input, shape index: {}]   ;;  %s481_s3 = inlined_call_operand.hbm [shape: f32[32,128], index: 3, kind: input, shape index: {}]   ;;  %s482_s4 = inlined_call_operand.hbm [shape: f32[4,32], index: 4, kind: output, shape index: {}]  }
   0x1   :  { %11 = vsyncpa [#allocation8], 0 }
   0x2   :  { %12 = vsyncpa [#allocation6], 0  ;;  %s380_s15 = smov [#allocation4]  }
   0x3   :  { %s20_s16 = sshll.u32 %s380_s15, 4  ;;  %s21_s16 = int_to_ptr.vmem [resolvable:$true] %s20_s16 }
   0x4   :  { %s290_s17 = scalar_lea.vmem %s21_s16, 512  ;;  %p295_p1 = scmp.lt.s32.totalorder %s21_s16, %s21_s16 }
   0x5   :  { %p291_p0 = scmp.ne.s32.totalorder %s21_s16, %s290_s17  ;;  %p296_p2 = scmp.lt.s32.totalorder %s290_s17, %s290_s17 }
   0x7   :  { %p297_p3 = por %p296_p2, %p295_p1 }
   0x9   :  { %p298_p4 = pnand %p297_p3, %p291_p0 }
   0xb   :  { %301 = shalt.err (!%p298_p4)
}
   0xc   :  { %s381_s18 = smov 64   ;;  %s382_s19 = smov 4  }
   0xd   :  { %26 = dma.hbm_to_vmem [thread:$0]  %s480_s2, 512, %s21_s16, [#allocation5], %s381_s18, %s381_s18, %s382_s19  }
   0xe   :  { %s383_s22 = smov [#allocation7]  }
   0xf   :  { %s32_s23 = sshll.u32 %s383_s22, 4  ;;  %s33_s23 = int_to_ptr.vmem [resolvable:$true] %s32_s23 }
  0x10   :  { %s310_s24 = scalar_lea.vmem %s33_s23, 512  ;;  %p315_p6 = scmp.lt.s32.totalorder %s33_s23, %s33_s23 }
  0x11   :  { %p311_p5 = scmp.ne.s32.totalorder %s33_s23, %s310_s24  ;;  %p316_p7 = scmp.lt.s32.totalorder %s310_s24, %s310_s24 }
  0x13   :  { %p317_p8 = por %p316_p7, %p315_p6 }
  0x15   :  { %p318_p9 = pnand %p317_p8, %p311_p5 }
  0x17   :  { %321 = shalt.err (!%p318_p9)
}
  0x18   :  { %s384_s25 = smov 128   ;;  %s385_s26 = smov 8  }
  0x19   :  { %38 = dma.hbm_to_vmem [thread:$0]  %s481_s3, 512, %s33_s23, [#allocation8], %s384_s25, %s384_s25, %s385_s26  }
  0x1a   :  { %358 = dma.done.wait [#allocation5], 512  }
  0x1b   :  { %359 = vsyncadd [#allocation5], 4294966784 }
  0x1c   :  { %360 = dma.done.wait [#allocation8], 512  }
  0x1d   :  { %361 = vsyncadd [#allocation8], 4294966784  ;;  %v427_v0 = vld [vmem:[%s479_s1] sm:$0xf]  ;;  %v431_v2 = vld [vmem:[#allocation7 + $0x8] sm:$0xff]  ;;  %p207_p10 = scmp.le.s32.totalorder %s478_s0, 0 }
  0x1e   :  { %v429_v1 = vld [vmem:[#allocation7] sm:$0xff]  ;;  %v433_v3 = vld [vmem:[#allocation7 + $0x10] sm:$0xff]  ;;  %v435_v4 = vld [vmem:[#allocation7 + $0x18] sm:$0xff]  ;;  %v440_v5 = vmov 0.0   ;;  %s446_s1 = smov (!%p207_p10), 0  }
  0x1f   :  { %200 = sbr.rel (%p207_p10) target bundleno = 730 (0x2da), region = 42 }
  0x24   :  { %v442_v6 = vmov 0.0   ;;  %v444_v7 = vmov 0.0  }
  0x25 LB: > { %v386_v8 = vmov 0.0   ;;  %vm387_vm0 = vmmov 0   ;;  %s388_s3 = smov 32   ;;  %vm65_vm1 = vcmask 261120   ;;  %s208_s6 = sshll.u32 %s374_s1, 2  ;;  %v389_v14 = vmov 0   ;;  %s374_s1 = sphi %s446_s1, %s54_s1   ;;  %v370_v7 = vphi %v444_v7, %v483_v7   ;;  %v366_v6 = vphi %v442_v6, %v171_v6  }
  0x26   : > { %216 = vmatprep.subr.mxu0 %v386_v8  ;;  %224 = vmatprep.mubr.msk.f32.mxu0 %vm387_vm0, %v386_v8  ;;  %s60_s7 = scalar_lea.vmem [#allocation4], %s208_s6  ;;  %s390_s8 = smov 64   ;;  %v163_v19 = vstv %s374_s1 }
  0x27   : > { %63 = vrot.lane.b32.xlu0 %v370_v7, %s388_s3  ;;  %217 = vmatpush3.msra.mxu0 %v435_v4  ;;  %v61_v10 = vld [vmem:[%s60_s7] sm:$0xf]  ;;  %vm164_vm2 = vcmp.lt.s32.totalorder %v163_v19, %v427_v0  ;;  %s54_s1 = sadd.s32 1, %s374_s1  }
  0x28   : > { %218 = vmatprep.subr.mxu0 %v386_v8  ;;  %272 = vset.pattern.permute.xlu1 %v389_v14  ;;  %v165_v23 = vsel %vm164_vm2, 1, %v389_v14  ;;  %p53_p11 = scmp.ge.s32.totalorder %s54_s1, %s478_s0 }
  0x29   : > { %219 = vmatpush3.msra.mxu0 %v433_v3  ;;  %273 = vset.pattern.permute.xlu0 %v389_v14 }
  0x2a   : > { %220 = vmatprep.subr.mxu0 %v386_v8 }
  0x2b   : > { %221 = vmatpush3.msra.mxu0 %v431_v2 }
  0x2c   : > { %222 = vmatprep.subr.mxu0 %v386_v8 }
  0x2d   : > { %223 = vmatpush3.msra.mxu0 %v429_v1 }
  0x99   : > { %v64_v9 = vpop.permute.xlu0 %63 }
  0x9a   : > { %225 = vmatmul.mubr.msk.f32.vlgmr.msra.gmra.mxu0 %vm65_vm1, %v64_v9 }
 0x15a   : > { %v134_v11 = vpop.f32.mrf.mxu0 }
 0x15b   : > { %v138_v12 = vadd.f32 %v134_v11, %v61_v10 }
 0x15c   : > { %v226_v13 = vpop.f32.mrf.mxu0 }
 0x15d   : > { %274 = vtanh.f32 %v138_v12  ;;  %v210_v16 = vmul.f32 -1.442695, %v138_v12 }
 0x15f   : > { %276 = vpow2.f32 %v210_v16 }
 0x16a   : > { %v275_v15 = vpop.eup %274 }
 0x16b   : > { %148 = vrot.lane.b32.xlu0 %v275_v15, %s390_s8 }
 0x16c   : > { %v277_v17 = vpop.eup %276 }
 0x16d   : > { %v142_v18 = vadd.f32 1.0, %v277_v17 }
 0x16f   : > { %278 = vrcp.f32 %v142_v18 }
 0x17c   : > { %v279_v20 = vpop.eup %278 }
 0x17d   : > { %v146_v24 = vmul.f32 %v366_v6, %v279_v20 }
 0x1dd   : > { %v149_v21 = vpop.permute.xlu0 %148 }
 0x1de   : > { %v151_v22 = vmul.f32 %v279_v20, %v149_v21 }
 0x1e0   : > { %153 = vrot.lane.b32.xlu1 %v151_v22, %s388_s3 }
 0x1e4   : > { %167 = vperm.xlu1 %272, %v165_v23  }
 0x252   : > { %v154_v25 = vpop.permute.xlu1 %153 }
 0x253   : > { %v156_v26 = vadd.f32 %v154_v25, %v146_v24 }
 0x255   : > { %280 = vtanh.f32 %v156_v26 }
 0x25f   : > { %v168_v27 = vpop.permute.xlu1 %167 }
 0x260   : > { %vm169_vm3 = vcmp.eq.s32.totalorder %v168_v27, 1 }
 0x261   : > { %v171_v6 = vsel %vm169_vm3, %v156_v26, %v366_v6  }
 0x262   : > { %v281_v28 = vpop.eup %280 }
 0x263   : > { %159 = vrot.lane.b32.xlu0 %v281_v28, %s390_s8 }
 0x2d5   : > { %v160_v29 = vpop.permute.xlu0 %159  ;;  %56 = sbr.rel (!%p53_p11) target bundleno = 37 (0x25), region = 48 }
 0x2d6   : > { %v162_v30 = vmul.f32 %v279_v20, %v160_v29 }
 0x2d8   : > { %v170_v31 = vsel %vm169_vm3, %v162_v30, %v370_v7  }
 0x2d9   : > { %v483_v7 = vmov %v170_v31  ;;  %v484_v5 = vmov (%p53_p11), %v170_v31 }
 0x2da PF:  { %s391_s11 = smov 32   ;;  %s392_s12 = smov [#allocation9]   ;;  %vm176_vm4 = vcmask 257024   ;;  %v378_v5 = vphi %v440_v5, %v484_v5  }
 0x2db   :  { %173 = vrot.lane.b32.xlu0 %v378_v5, %s391_s11  ;;  %s184_s13 = sshll.u32 %s392_s12, 4  ;;  %s185_s13 = int_to_ptr.vmem [resolvable:$true] %s184_s13 }
 0x2dc   :  { %s322_s14 = scalar_lea.vmem %s185_s13, 64  ;;  %p327_p13 = scmp.lt.s32.totalorder %s185_s13, %s185_s13 }
 0x2dd   :  { %p323_p12 = scmp.ne.s32.totalorder %s185_s13, %s322_s14  ;;  %p328_p0 = scmp.lt.s32.totalorder %s322_s14, %s322_s14 }
 0x2df   :  { %p329_p1 = por %p328_p0, %p327_p13 }
 0x2e1   :  { %p330_p2 = pnand %p329_p1, %p323_p12 }
 0x34d   :  { %v174_v32 = vpop.permute.xlu0 %173 }
 0x34e   :  { %177 = vst.msk [vmem:[#allocation9] sm:$0xf] %vm176_vm4, %v174_v32 }
 0x34f   :  { %333 = shalt.err (!%p330_p2)
}
 0x350   :  { %187 = dma.vmem_to_hbm [thread:$0]  %s185_s13, 64, %s482_s4, [#allocation6]  }
 0x351   :  { %362 = dma.done.wait [#allocation6], 64  }
 0x352   :  { %363 = vsyncadd [#allocation6], 4294967232 }
 0x353   :  { %191 = vsyncpa [#allocation5], 1 }
 0x354   :  { %192 = vsyncpa [#allocation8], 1 }
 0x355   :  { %193 = vsyncpa [#allocation6], 1 }

</bundles_post_ra>
